<compile_context>
chip_gen: v7x
topology: tpu7x:2x2x1
jax: 0.10.0
libtpu: 0.0.40
codegen_flags: <defaults>
</compile_context>

<pallas_src>
import functools

import jax
import jax.numpy as jnp
from jax.experimental import pallas as pl
from jax.experimental.pallas import tpu as pltpu


def _round_up(n, m):
    return ((n + m - 1) // m) * m


def _fused_attention_kernel(x_ref, whp_ref, bhp_ref, wop_ref, bop_ref, o_ref, *, n_heads):
    # x_ref  : (tb, T, D)            batch tile of the input
    # whp_ref: (D, Hh_pad)           pre-transposed, head-stacked hidden weights (lane-padded)
    # bhp_ref: (1, Hh_pad)           head-stacked hidden bias
    # wop_ref: (Hh_pad, HD_pad)      block-diagonal, pre-transposed out weights (lane-padded)
    # bop_ref: (1, HD_pad)           head-stacked out bias
    # o_ref  : (tb, HD_pad)          lane-dense output slab (last H*D..HD_pad lanes are junk/zero)
    x = x_ref[...]                                    # (tb, T, D) f32
    tb, T, D = x.shape
    HDp = o_ref.shape[-1]

    # hidden = tanh(x @ Wh_packed + bh)  -> one MXU matmul for all heads (EUP tanh dominates)
    xf = x.reshape(tb * T, D)
    h = jnp.tanh(
        jnp.dot(xf, whp_ref[...], preferred_element_type=jnp.float32) + bhp_ref[...]
    )                                                 # (tb*T, Hh_pad)

    # scores = hidden @ Wo_blockdiag + bo  -> one MXU matmul for all heads
    s = jnp.dot(h, wop_ref[...], preferred_element_type=jnp.float32) + bop_ref[...]
    s = s.reshape(tb, T, HDp)                         # (tb, T, HD_pad)

    # numerically stable softmax over time; normalization folded out of the 3-D tensor
    m = jnp.max(s, axis=1, keepdims=True)             # (tb, 1, HD_pad)  (XLU sublane reduce)
    e = jnp.exp(s - m)                                # (tb, T, HD_pad)  (EUP)

    # per-head weighted sum without replicating x across lanes (no x_rep concat)
    pieces = []
    for head in range(n_heads):
        e_h = e[:, :, head * D:(head + 1) * D]        # static lane slice (tb, T, D)
        num_h = jnp.sum(e_h * x, axis=1)              # (tb, D)
        den_h = jnp.sum(e_h, axis=1)                  # (tb, D)
        r = pl.reciprocal(den_h, approx=True)         # EUP slot
        r = r * (2.0 - den_h * r)                     # one Newton step (VPU filler) -> ~f32 acc
        pieces.append(num_h * r)
    pad = HDp - n_heads * D
    if pad:
        pieces.append(jnp.zeros((tb, pad), jnp.float32))
    o_ref[...] = pieces[0] if len(pieces) == 1 else jnp.concatenate(pieces, axis=-1)


def multi_attention_pallas(x, wh, bh, wo, bo, *, batch_tile=None,
                           vmem_tile_budget_bytes=16 * 1024 * 1024):
    """x: (B, T, D); wh: (H, hidden, D); bh: (H, hidden); wo: (H, D, hidden); bo: (H, D).
    Returns (B, H*D) — torch.cat of per-head attended vectors (H=1 == `attention`)."""
    B, T, D = x.shape
    H, hidden, _ = wh.shape
    Hh, HD = H * hidden, H * D
    Hh_pad = _round_up(Hh, 128)
    HD_pad = _round_up(HD, 128)

    # ---- host-side weight packing + lane padding (done once; zero pad is inert) ----
    whp = jnp.transpose(wh, (2, 0, 1)).reshape(D, Hh)                  # (D, H*hidden)
    whp = jnp.pad(whp, ((0, 0), (0, Hh_pad - Hh)))
    bhp = jnp.pad(bh.reshape(1, Hh), ((0, 0), (0, Hh_pad - Hh)))
    # TODO(synk): for H > ~4 replace the block-diagonal pack with a per-head batched matmul
    # (block-diag does H^2 blocks of MXU work of which only H are nonzero).
    wop = jax.scipy.linalg.block_diag(*[wo[i].T for i in range(H)])    # (H*hidden, H*D)
    wop = jnp.pad(wop, ((0, Hh_pad - Hh), (0, HD_pad - HD)))
    bop = jnp.pad(bo.reshape(1, HD), ((0, 0), (0, HD_pad - HD)))

    # ---- batch-tile selection: as large as the VMEM budget allows, multiple of 8 ----
    if batch_tile is None:
        # live f32 bytes per batch row per step: x (double-buffered), h, s+e, out (double-buf)
        per_row = 4 * (2 * T * D + T * Hh_pad + 2 * T * HD_pad + 2 * HD_pad)
        tb = min(512, max(8, vmem_tile_budget_bytes // max(per_row, 1)))
        tb = max(8, (tb // 8) * 8)
        if B <= tb:
            if B >= 16:
                # split into (at least) 2 tiles so "parallel" can shard across v7x's 2 TCs
                tb = _round_up((B + 1) // 2, 8)
            else:
                tb = B
        # if B > tb the grid already has >= 2 steps
    else:
        tb = batch_tile

    Bp = _round_up(B, tb)
    xp = x if Bp == B else jnp.pad(x, ((0, Bp - B), (0, 0), (0, 0)))
    grid = (Bp // tb,)

    kernel = functools.partial(_fused_attention_kernel, n_heads=H)

    out = pl.pallas_call(
        kernel,
        out_shape=jax.ShapeDtypeStruct((Bp, HD_pad), jnp.float32),
        grid_spec=pltpu.PrefetchScalarGridSpec(
            num_scalar_prefetch=0,
            grid=grid,
            in_specs=[
                pl.BlockSpec((tb, T, D), lambda b: (b, 0, 0)),            # x (batch-tiled)
                pl.BlockSpec((D, Hh_pad), lambda b: (0, 0)),              # Wh packed (padded)
                pl.BlockSpec((1, Hh_pad), lambda b: (0, 0)),              # bh packed
                pl.BlockSpec((Hh_pad, HD_pad), lambda b: (0, 0)),         # Wo block-diag
                pl.BlockSpec((1, HD_pad), lambda b: (0, 0)),              # bo packed
            ],
            out_specs=pl.BlockSpec((tb, HD_pad), lambda b: (b, 0)),       # lane-dense output
        ),
        compiler_params=pltpu.CompilerParams(
            dimension_semantics=("parallel",),      # batch tiles shard across TCs (v7x)
            vmem_limit_bytes=48 * 1024 * 1024,      # explicit headroom; < v7x 64 MiB physical
        ),
    )(xp, whp, bhp, wop, bop)
    return out[:B, :HD]


def multi_attention_ref(x, wh, bh, wo, bo):
    """Pure-JAX reference matching the PyTorch forward (per-head loop + concat)."""
    outs = []
    for h in range(wh.shape[0]):
        hid = jnp.tanh(jnp.einsum("btd,hd->bth", x, wh[h]) + bh[h])
        s = jnp.einsum("bth,dh->btd", hid, wo[h]) + bo[h]
        alpha = jax.nn.softmax(s, axis=1)
        outs.append(jnp.sum(alpha * x, axis=1))
    return jnp.concatenate(outs, axis=1)


if __name__ == "__main__":
    # Small shapes consistent with the module's forward.
    B, T = 2, 8           # batch, sequence length
    in_size = 32          # feature dim
    hidden_size = 32
    n_heads = 2

    key = jax.random.PRNGKey(0)
    kx, kwh, kbh, kwo, kbo = jax.random.split(key, 5)

    x = jax.random.normal(kx, (B, T, in_size), dtype=jnp.float32)
    # Deterministic synthetic params (the PyTorch orthogonal init is init-time only;
    # it does not change forward-pass semantics).
    wh = jax.random.normal(kwh, (n_heads, hidden_size, in_size), jnp.float32) * 0.1
    bh = jax.random.normal(kbh, (n_heads, hidden_size), jnp.float32) * 0.1
    wo = jax.random.normal(kwo, (n_heads, in_size, hidden_size), jnp.float32) * 0.1
    bo = jax.random.normal(kbo, (n_heads, in_size), jnp.float32) * 0.1

    # Multi-head (fused) forward.
    out = jax.block_until_ready(multi_attention_pallas(x, wh, bh, wo, bo))
    ref = multi_attention_ref(x, wh, bh, wo, bo)
    assert out.shape == (B, n_heads * in_size), out.shape
    assert jnp.allclose(out, ref, atol=1e-4, rtol=1e-4), float(jnp.max(jnp.abs(out - ref)))

    # Single-head case == the original `attention` module's forward.
    out1 = jax.block_until_ready(multi_attention_pallas(x, wh[:1], bh[:1], wo[:1], bo[:1]))
    ref1 = multi_attention_ref(x, wh[:1], bh[:1], wo[:1], bo[:1])
    assert out1.shape == (B, in_size), out1.shape
    assert jnp.allclose(out1, ref1, atol=1e-4, rtol=1e-4), float(jnp.max(jnp.abs(out1 - ref1)))

    # Larger batch exercising multi-tile grid + batch padding (B=20 -> tb=16, grid=2).
    B2 = 20
    x2 = jax.random.normal(jax.random.PRNGKey(1), (B2, T, in_size), jnp.float32)
    out2 = jax.block_until_ready(multi_attention_pallas(x2, wh, bh, wo, bo))
    ref2 = multi_attention_ref(x2, wh, bh, wo, bo)
    assert out2.shape == (B2, n_heads * in_size), out2.shape
    assert jnp.allclose(out2, ref2, atol=1e-4, rtol=1e-4), float(jnp.max(jnp.abs(out2 - ref2)))

    print("KERNEL_OK")
</pallas_src>

<mosaic_0001>
module attributes {stable_mosaic.version = 11 : i64} {
  func.func @_fused_attention_kernel(%arg0: i32, %arg1: memref<2x8x32xf32, #tpu.memory_space<vmem>>, %arg2: memref<32x128xf32, #tpu.memory_space<vmem>>, %arg3: memref<1x128xf32, #tpu.memory_space<vmem>>, %arg4: memref<128x128xf32, #tpu.memory_space<vmem>>, %arg5: memref<1x128xf32, #tpu.memory_space<vmem>>, %arg6: memref<2x128xf32, #tpu.memory_space<vmem>>) attributes {dimension_semantics = [#tpu.dimension_semantics<parallel>], iteration_bounds = array<i64: 1>, scalar_prefetch = 0 : i64, scratch_operands = 0 : i64, tpu.core_type = #tpu.core_type<tc>, window_params = [{transform_indices = @transform_0, window_bounds = array<i64: 2, 8, 32>}, {pipeline_mode = #tpu.pipeline_mode<synchronous>, transform_indices = @transform_1, window_bounds = array<i64: 32, 128>}, {pipeline_mode = #tpu.pipeline_mode<synchronous>, transform_indices = @transform_2, window_bounds = array<i64: 1, 128>}, {pipeline_mode = #tpu.pipeline_mode<synchronous>, transform_indices = @transform_3, window_bounds = array<i64: 128, 128>}, {pipeline_mode = #tpu.pipeline_mode<synchronous>, transform_indices = @transform_4, window_bounds = array<i64: 1, 128>}, {transform_indices = @transform_5, window_bounds = array<i64: 2, 128>}]} {
    %c0 = arith.constant 0 : index
    %c0_0 = arith.constant 0 : index
    %c0_1 = arith.constant 0 : index
    %0 = vector.load %arg1[%c0, %c0_0, %c0_1] : memref<2x8x32xf32, #tpu.memory_space<vmem>>, vector<2x8x32xf32>
    %1 = vector.shape_cast %0 : vector<2x8x32xf32> to vector<16x32xf32>
    %c0_2 = arith.constant 0 : index
    %c0_3 = arith.constant 0 : index
    %2 = vector.load %arg2[%c0_2, %c0_3] : memref<32x128xf32, #tpu.memory_space<vmem>>, vector<32x128xf32>
    %cst = arith.constant dense<0.000000e+00> : vector<16x128xf32>
    %3 = tpu.matmul %1, %2, %cst {dimension_numbers = #tpu.dot_dimension_numbers<[1], [0], [0], [1], [0, 0, 1, 1], [], []>} : vector<16x32xf32>, vector<32x128xf32>, vector<16x128xf32> -> vector<16x128xf32>
    %c0_4 = arith.constant 0 : index
    %c0_5 = arith.constant 0 : index
    %4 = vector.load %arg3[%c0_4, %c0_5] : memref<1x128xf32, #tpu.memory_space<vmem>>, vector<1x128xf32>
    %5 = vector.broadcast %4 : vector<1x128xf32> to vector<16x128xf32>
    %6 = arith.addf %3, %5 : vector<16x128xf32>
    %7 = math.tanh %6 : vector<16x128xf32>
    %c0_6 = arith.constant 0 : index
    %c0_7 = arith.constant 0 : index
    %8 = vector.load %arg4[%c0_6, %c0_7] : memref<128x128xf32, #tpu.memory_space<vmem>>, vector<128x128xf32>
    %cst_8 = arith.constant dense<0.000000e+00> : vector<16x128xf32>
    %9 = tpu.matmul %7, %8, %cst_8 {dimension_numbers = #tpu.dot_dimension_numbers<[1], [0], [0], [1], [0, 0, 1, 1], [], []>} : vector<16x128xf32>, vector<128x128xf32>, vector<16x128xf32> -> vector<16x128xf32>
    %c0_9 = arith.constant 0 : index
    %c0_10 = arith.constant 0 : index
    %10 = vector.load %arg5[%c0_9, %c0_10] : memref<1x128xf32, #tpu.memory_space<vmem>>, vector<1x128xf32>
    %11 = vector.broadcast %10 : vector<1x128xf32> to vector<16x128xf32>
    %12 = arith.addf %9, %11 : vector<16x128xf32>
    %13 = vector.shape_cast %12 : vector<16x128xf32> to vector<2x8x128xf32>
    %cst_11 = arith.constant dense<0xFF800000> : vector<2x128xf32>
    %14 = vector.multi_reduction <maximumf>, %13, %cst_11 [1] : vector<2x8x128xf32> to vector<2x128xf32>
    %15 = vector.shape_cast %14 : vector<2x128xf32> to vector<2x1x128xf32>
    %16 = vector.broadcast %15 : vector<2x1x128xf32> to vector<2x8x128xf32>
    %17 = arith.subf %13, %16 : vector<2x8x128xf32>
    %18 = math.exp %17 : vector<2x8x128xf32>
    %19 = vector.extract_strided_slice %18 {offsets = [0, 0, 0], sizes = [2, 8, 32], strides = [1, 1, 1]} : vector<2x8x128xf32> to vector<2x8x32xf32>
    %20 = arith.mulf %19, %0 : vector<2x8x32xf32>
    %cst_12 = arith.constant dense<0.000000e+00> : vector<2x32xf32>
    %21 = vector.multi_reduction <add>, %20, %cst_12 [1] : vector<2x8x32xf32> to vector<2x32xf32>
    %cst_13 = arith.constant dense<0.000000e+00> : vector<2x32xf32>
    %22 = vector.multi_reduction <add>, %19, %cst_13 [1] : vector<2x8x32xf32> to vector<2x32xf32>
    %23 = tpu.reciprocal %22 {approx = true} : vector<2x32xf32> -> vector<2x32xf32>
    %24 = arith.mulf %22, %23 : vector<2x32xf32>
    %cst_14 = arith.constant 2.000000e+00 : f32
    %25 = vector.broadcast %cst_14 : f32 to vector<2x32xf32>
    %26 = arith.subf %25, %24 : vector<2x32xf32>
    %27 = arith.mulf %23, %26 : vector<2x32xf32>
    %28 = arith.mulf %21, %27 : vector<2x32xf32>
    %29 = vector.extract_strided_slice %18 {offsets = [0, 0, 32], sizes = [2, 8, 32], strides = [1, 1, 1]} : vector<2x8x128xf32> to vector<2x8x32xf32>
    %30 = arith.mulf %29, %0 : vector<2x8x32xf32>
    %cst_15 = arith.constant dense<0.000000e+00> : vector<2x32xf32>
    %31 = vector.multi_reduction <add>, %30, %cst_15 [1] : vector<2x8x32xf32> to vector<2x32xf32>
    %cst_16 = arith.constant dense<0.000000e+00> : vector<2x32xf32>
    %32 = vector.multi_reduction <add>, %29, %cst_16 [1] : vector<2x8x32xf32> to vector<2x32xf32>
    %33 = tpu.reciprocal %32 {approx = true} : vector<2x32xf32> -> vector<2x32xf32>
    %34 = arith.mulf %32, %33 : vector<2x32xf32>
    %cst_17 = arith.constant 2.000000e+00 : f32
    %35 = vector.broadcast %cst_17 : f32 to vector<2x32xf32>
    %36 = arith.subf %35, %34 : vector<2x32xf32>
    %37 = arith.mulf %33, %36 : vector<2x32xf32>
    %38 = arith.mulf %31, %37 : vector<2x32xf32>
    %cst_18 = arith.constant 0.000000e+00 : f32
    %39 = vector.broadcast %cst_18 : f32 to vector<2x64xf32>
    %40 = tpu.concatenate %28, %38, %39 in 1 : vector<2x32xf32>, vector<2x32xf32>, vector<2x64xf32> -> vector<2x128xf32>
    %c0_19 = arith.constant 0 : index
    %c0_20 = arith.constant 0 : index
    %41 = vector.load %arg6[%c0_19, %c0_20] : memref<2x128xf32, #tpu.memory_space<vmem>>, vector<2x128xf32>
    tpu.vector_store %arg6[%c0_19, %c0_20], %40 {strides = array<i32>} : memref<2x128xf32, #tpu.memory_space<vmem>>, vector<2x128xf32>,
    return
  }
  func.func @transform_0(%arg0: i32) -> (i32, i32, i32) {
    %c0_i32 = arith.constant 0 : i32
    %c0_i32_0 = arith.constant 0 : i32
    %c0_i32_1 = arith.constant 0 : i32
    return %arg0, %c0_i32, %c0_i32_0 : i32, i32, i32
  }
  func.func @transform_1(%arg0: i32) -> (i32, i32) {
    %c0_i32 = arith.constant 0 : i32
    %c0_i32_0 = arith.constant 0 : i32
    %c0_i32_1 = arith.constant 0 : i32
    return %c0_i32, %c0_i32_0 : i32, i32
  }
  func.func @transform_2(%arg0: i32) -> (i32, i32) {
    %c0_i32 = arith.constant 0 : i32
    %c0_i32_0 = arith.constant 0 : i32
    %c0_i32_1 = arith.constant 0 : i32
    return %c0_i32, %c0_i32_0 : i32, i32
  }
  func.func @transform_3(%arg0: i32) -> (i32, i32) {
    %c0_i32 = arith.constant 0 : i32
    %c0_i32_0 = arith.constant 0 : i32
    %c0_i32_1 = arith.constant 0 : i32
    return %c0_i32, %c0_i32_0 : i32, i32
  }
  func.func @transform_4(%arg0: i32) -> (i32, i32) {
    %c0_i32 = arith.constant 0 : i32
    %c0_i32_0 = arith.constant 0 : i32
    %c0_i32_1 = arith.constant 0 : i32
    return %c0_i32, %c0_i32_0 : i32, i32
  }
  func.func @transform_5(%arg0: i32) -> (i32, i32) {
    %c0_i32 = arith.constant 0 : i32
    %c0_i32_0 = arith.constant 0 : i32
    return %arg0, %c0_i32 : i32, i32
  }
}

</mosaic_0001>

<bundles_post_ra>
// kernel: tpu_custom_call.1
= control target key start
LH: loop header
LB: loop body
LE: loop exit
PB: predicated region body
PF: predicated region fallthrough
CT: control target
= control target key end

     0   :  { %10 = vsyncpa [#allocation3], 0  ;;  %s750_s0 = inlined_call_operand.hbm [shape: f32[2,8,32], index: 0, kind: input, shape index: {}]   ;;  %s751_s1 = inlined_call_operand.hbm [shape: f32[32,128], index: 1, kind: input, shape index: {}]   ;;  %s752_s2 = inlined_call_operand.vmem [shape: f32[1,128], index: 2, kind: input, shape index: {}]   ;;  %s753_s3 = inlined_call_operand.hbm [shape: f32[128,128], index: 3, kind: input, shape index: {}]   ;;  %s754_s4 = inlined_call_operand.vmem [shape: f32[1,128], index: 4, kind: input, shape index: {}]   ;;  %s755_s5 = inlined_call_operand.hbm [shape: f32[2,128], index: 5, kind: output, shape index: {}]  }
   0x1   :  { %11 = vsyncpa [#allocation6], 0 }
   0x2   :  { %12 = vsyncpa [#allocation4], 0  ;;  %s622_s18 = smov [#allocation5]   ;;  %s623_s20 = smov [#allocation2]  }
   0x3   :  { %s30_s19 = sshll.u32 %s622_s18, 4  ;;  %s18_s21 = sshll.u32 %s623_s20, 4  ;;  %s31_s19 = int_to_ptr.vmem [resolvable:$true] %s30_s19  ;;  %s659_s21 = int_to_ptr.vmem [resolvable:$true] %s18_s21 }
   0x4   :  { %s528_s24 = scalar_lea.hbm %s751_s1, 512 }
   0x5   :  { %p529_p0 = scmp.ne.s32.totalorder %s751_s1, %s528_s24  ;;  %p532_p1 = scmp.lt.u32.totalorder %s528_s24, %s751_s1 }
   0x7   :  { %p534_p2 = pnand %p532_p1, %p529_p0 }
   0x9   :  { %537 = shalt.err (!%p534_p2)
}
   0xa   :  { %s538_s29 = scalar_lea.vmem %s31_s19, 512  ;;  %p543_p4 = scmp.lt.s32.totalorder %s31_s19, %s31_s19 }
   0xb   :  { %p539_p3 = scmp.ne.s32.totalorder %s31_s19, %s538_s29  ;;  %p544_p5 = scmp.lt.s32.totalorder %s538_s29, %s538_s29 }
   0xd   :  { %p545_p6 = por %p544_p5, %p543_p4 }
   0xf   :  { %p546_p7 = pnand %p545_p6, %p539_p3 }
  0x11   :  { %549 = shalt.err (!%p546_p7)
}
  0x12   :  { %s624_s30 = smov 128   ;;  %s625_s6 = smov 8  }
  0x13   :  { %36 = dma.hbm_to_vmem [thread:$0]  %s751_s1, 512, %s31_s19, [#allocation6], %s624_s30, %s624_s30, %s625_s6  }
  0x14   :  { %s550_s11 = scalar_lea.hbm %s750_s0, 256 }
  0x15   :  { %p551_p8 = scmp.ne.s32.totalorder %s750_s0, %s550_s11  ;;  %p554_p9 = scmp.lt.u32.totalorder %s550_s11, %s750_s0 }
  0x17   :  { %p556_p10 = pnand %p554_p9, %p551_p8 }
  0x19   :  { %559 = shalt.err (!%p556_p10)
}
  0x1a   :  { %s560_s16 = scalar_lea.vmem %s659_s21, 256  ;;  %p565_p12 = scmp.lt.s32.totalorder %s659_s21, %s659_s21 }
  0x1b   :  { %p561_p11 = scmp.ne.s32.totalorder %s659_s21, %s560_s16  ;;  %p566_p13 = scmp.lt.s32.totalorder %s560_s16, %s560_s16 }
  0x1d   :  { %p567_p0 = por %p566_p13, %p565_p12 }
  0x1f   :  { %p568_p1 = pnand %p567_p0, %p561_p11 }
  0x21   :  { %571 = shalt.err (!%p568_p1)
}
  0x22   :  { %24 = dma.hbm_to_vmem [thread:$0]  %s750_s0, 256, %s659_s21, [#allocation3], %s624_s30, %s624_s30, %s625_s6  }
  0x23   :  { %s626_s18 = smov [#allocation7]   ;;  %s572_s23 = scalar_lea.hbm %s753_s3, 2048 }
  0x24   :  { %s44_s19 = sshll.u32 %s626_s18, 4  ;;  %p573_p2 = scmp.ne.s32.totalorder %s753_s3, %s572_s23  ;;  %s45_s19 = int_to_ptr.vmem [resolvable:$true] %s44_s19 }
  0x25   :  { %p576_p3 = scmp.lt.u32.totalorder %s572_s23, %s753_s3 }
  0x27   :  { %p578_p4 = pnand %p576_p3, %p573_p2 }
  0x29   :  { %581 = shalt.err (!%p578_p4)
}
  0x2a   :  { %s582_s28 = scalar_lea.vmem %s45_s19, 2048  ;;  %p587_p6 = scmp.lt.s32.totalorder %s45_s19, %s45_s19 }
  0x2b   :  { %p583_p5 = scmp.ne.s32.totalorder %s45_s19, %s582_s28  ;;  %p588_p7 = scmp.lt.s32.totalorder %s582_s28, %s582_s28 }
  0x2d   :  { %p589_p8 = por %p588_p7, %p587_p6 }
  0x2f   :  { %p590_p9 = pnand %p589_p8, %p583_p5 }
  0x31   :  { %593 = shalt.err (!%p590_p9)
}
  0x32   :  { %50 = dma.hbm_to_vmem [thread:$0]  %s753_s3, 2048, %s45_s19, [#allocation6], %s624_s30, %s624_s30, %s625_s6  }
  0x33   :  { %616 = dma.done.wait [#allocation3], 256  }
  0x34   :  { %617 = vsyncadd [#allocation3], 4294967040 }
  0x35   :  { %618 = dma.done.wait [#allocation6], 2560  }
  0x36   :  { %619 = vsyncadd [#allocation6], 4294964736  ;;  %vm75_vm0 = vcmask 261120   ;;  %v64_v0 = vld [vmem:[#allocation5] sm:$0xff]  ;;  %v65_v1 = vld [vmem:[#allocation5 + $0x8] sm:$0xff]  ;;  %s627_s3 = smov 32  }
  0x37   :  { %v66_v2 = vld [vmem:[#allocation5 + $0x10] sm:$0xff]  ;;  %v465_v3 = vpack.c.bf16 %v65_v1, %v64_v0  ;;  %v67_v4 = vld [vmem:[#allocation5 + $0x18] sm:$0xff]  ;;  %v159_v7 = vld [vmem:[#allocation7] sm:$0xff]  ;;  %vm323_vm1 = vcmask 523520   ;;  %vm364_vm2 = vcmask 1041409   ;;  %vm372_vm3 = vcmask 523264  }
  0x38   :  { %v711_v5 = vld [vmem:[#allocation2] sm:$0xff]  ;;  %v469_v6 = vpack.c.bf16 %v67_v4, %v66_v2  ;;  %v160_v8 = vld [vmem:[#allocation7 + $0x8] sm:$0xff]  ;;  %v162_v11 = vld [vmem:[#allocation7 + $0x18] sm:$0xff] }
  0x39   :  { %427 = vmatprep.mubr.msk.f32.mxu0 %vm75_vm0, %v711_v5  ;;  %v161_v9 = vld [vmem:[#allocation7 + $0x10] sm:$0xff]  ;;  %466 = vmatprep.subr.bf16.mxu0 %v465_v3  ;;  %v473_v10 = vpack.c.bf16 %v160_v8, %v159_v7  ;;  %v163_v13 = vld [vmem:[#allocation7 + $0x20] sm:$0xff]  ;;  %v164_v14 = vld [vmem:[#allocation7 + $0x28] sm:$0xff] }
  0x3a   :  { %468 = vmatpush3.bf16.msra.mxu0 %v465_v3  ;;  %v477_v12 = vpack.c.bf16 %v162_v11, %v161_v9  ;;  %v481_v15 = vpack.c.bf16 %v164_v14, %v163_v13  ;;  %v715_v16 = vld [vmem:[#allocation2 + $0x8] sm:$0xff]  ;;  %v165_v17 = vld [vmem:[#allocation7 + $0x30] sm:$0xff]  ;;  %v167_v20 = vld [vmem:[#allocation7 + $0x40] sm:$0xff]  ;;  %315 = vrot.lane.b32.xlu0 %v711_v5, %s627_s3 }
  0x3b   :  { %470 = vmatprep.subr.bf16.mxu0 %v469_v6  ;;  %474 = vmatprep.subr.bf16.mxu1 %v473_v10  ;;  %v166_v18 = vld [vmem:[#allocation7 + $0x38] sm:$0xff]  ;;  %v168_v21 = vld [vmem:[#allocation7 + $0x48] sm:$0xff]  ;;  %v169_v23 = vld [vmem:[#allocation7 + $0x50] sm:$0xff] }
  0x3c   :  { %476 = vmatpush3.bf16.msra.mxu1 %v473_v10  ;;  %v485_v19 = vpack.c.bf16 %v166_v18, %v165_v17  ;;  %v489_v22 = vpack.c.bf16 %v168_v21, %v167_v20  ;;  %v170_v24 = vld [vmem:[#allocation7 + $0x58] sm:$0xff]  ;;  %v171_v26 = vld [vmem:[#allocation7 + $0x60] sm:$0xff]  ;;  %v172_v27 = vld [vmem:[#allocation7 + $0x68] sm:$0xff] }
  0x3d   :  { %478 = vmatprep.subr.bf16.mxu1 %v477_v12  ;;  %v493_v25 = vpack.c.bf16 %v170_v24, %v169_v23  ;;  %v173_v28 = vld [vmem:[#allocation7 + $0x70] sm:$0xff]  ;;  %v497_v29 = vpack.c.bf16 %v172_v27, %v171_v26  ;;  %v174_v30 = vld [vmem:[#allocation7 + $0x78] sm:$0xff] }
  0x3e   :  { %472 = vmatpush3.bf16.msra.mxu0 %v469_v6  ;;  %v501_v31 = vpack.c.bf16 %v174_v30, %v173_v28  ;;  %317 = vrot.lane.b32.xlu0 %v715_v16, %s627_s3  ;;  %v391_v32 = vld [vmem:[%s752_s2] ss:$0 sm:$0xff]  ;;  %s628_s2 = smov [#allocation8]  }
  0x3f   :  { %v394_v39 = vld [vmem:[%s754_s4] ss:$0 sm:$0xff]  ;;  %s381_s4 = sshll.u32 %s628_s2, 4  ;;  %s382_s4 = int_to_ptr.vmem [resolvable:$true] %s381_s4 }
  0x40   :  { %480 = vmatpush3.bf16.msra.mxu1 %v477_v12  ;;  %s594_s8 = scalar_lea.vmem %s382_s4, 32  ;;  %p599_p11 = scmp.lt.s32.totalorder %s382_s4, %s382_s4 }
  0x41   :  { %428 = vmatmul.mubr.msk.f32.vlgmr.msra.gmra.mrb[0].mxu0 %vm75_vm0, %v715_v16  ;;  %482 = vmatprep.subr.bf16.mxu1 %v481_v15  ;;  %p595_p10 = scmp.ne.s32.totalorder %s382_s4, %s594_s8  ;;  %p600_p12 = scmp.lt.s32.totalorder %s594_s8, %s594_s8 }
  0x43   :  { %p601_p13 = por %p600_p12, %p599_p11 }
  0x44   :  { %484 = vmatpush3.bf16.msra.mxu1 %v481_v15 }
  0x45   :  { %486 = vmatprep.subr.bf16.mxu1 %v485_v19  ;;  %p602_p0 = pnand %p601_p13, %p595_p10 }
  0x48   :  { %488 = vmatpush3.bf16.msra.mxu1 %v485_v19 }
  0x49   :  { %490 = vmatprep.subr.bf16.mxu1 %v489_v22 }
  0x4c   :  { %492 = vmatpush3.bf16.msra.mxu1 %v489_v22 }
  0x4d   :  { %494 = vmatprep.subr.bf16.mxu1 %v493_v25 }
  0x50   :  { %496 = vmatpush3.bf16.msra.mxu1 %v493_v25 }
  0x51   :  { %498 = vmatprep.subr.bf16.mxu1 %v497_v29 }
  0x54   :  { %500 = vmatpush3.bf16.msra.mxu1 %v497_v29 }
  0x55   :  { %502 = vmatprep.subr.bf16.mxu1 %v501_v31 }
  0x58   :  { %504 = vmatpush3.bf16.msra.mxu1 %v501_v31 }
  0xac   :  { %v316_v60 = vpop.permute.xlu0 %315 }
  0xb0   :  { %v318_v61 = vpop.permute.xlu0 %317 }
 0x114   :  { %v429_v33 = vpop.f32.mrb[0].mxu0 }
 0x115   :  { %v154_v34 = vadd.f32 %v429_v33, %v391_v32  ;;  %v148_v35 = vpop.f32.mrb[1].mxu0 }
 0x116   :  { %v149_v36 = vadd.f32 %v391_v32, %v148_v35 }
 0x118   :  { %512 = vtanh.f32 %v149_v36 }
 0x119   :  { %514 = vtanh.f32 %v154_v34 }
 0x122   :  { %v513_v37 = vpop.eup %512 }
 0x123   :  { %v515_v38 = vpop.eup %514  ;;  %462 = vmatprep.mubr.f32.mxu1 %v513_v37 }
 0x124   :  { %463 = vmatmul.mubr.f32.vlgmr.msra.gmra.mrb[0].mxu1 %v515_v38 }
 0x1f7   :  { %v464_v40 = vpop.f32.mrb[0].mxu1 }
 0x1f8   :  { %v254_v41 = vadd.f32 %v464_v40, %v394_v39  ;;  %v248_v42 = vpop.f32.mrb[1].mxu1 }
 0x1f9   :  { %v249_v43 = vadd.f32 %v394_v39, %v248_v42 }
 0x1fa   :  { %v263_v44 = vrot.slane %v254_v41, 4 }
 0x1fb   :  { %v257_v45 = vrot.slane %v249_v43, 4 }
 0x1fc   :  { %v264_v46 = vmax.f32 %v254_v41, %v263_v44 }
 0x1fd   :  { %v258_v47 = vmax.f32 %v249_v43, %v257_v45 }
 0x1fe   :  { %v265_v48 = vrot.slane %v264_v46, 2 }
 0x1ff   :  { %v259_v49 = vrot.slane %v258_v47, 2 }
 0x200   :  { %v266_v50 = vmax.f32 %v264_v46, %v265_v48 }
 0x201   :  { %v260_v51 = vmax.f32 %v258_v47, %v259_v49 }
 0x202   :  { %v267_v52 = vrot.slane %v266_v50, 1 }
 0x203   :  { %v261_v53 = vrot.slane %v260_v51, 1 }
 0x204   :  { %v268_v54 = vmax.f32 %v266_v50, %v267_v52 }
 0x205   :  { %v262_v55 = vmax.f32 %v260_v51, %v261_v53 }
 0x206   :  { %v270_v56 = vsub.f32 %v254_v41, %v268_v54 }
 0x207   :  { %v269_v57 = vsub.f32 %v249_v43, %v262_v55 }
 0x208   :  { %v273_v58 = vmul.f32 1.442695, %v270_v56 }
 0x209   :  { %v271_v59 = vmul.f32 1.442695, %v269_v57 }
 0x20a   :  { %516 = vpow2.f32 %v273_v58 }
 0x20b   :  { %518 = vpow2.f32 %v271_v59 }
 0x214   :  { %v517_v62 = vpop.eup %516 }
 0x215   :  { %v519_v63 = vpop.eup %518  ;;  %v345_v0 = vsel %vm323_vm1, %v517_v62, 0.0  ;;  %v322_v3 = vmul.f32 %v517_v62, %v318_v61  ;;  %v298_v8 = vsel %vm75_vm0, %v517_v62, 0.0  ;;  %v276_v12 = vmul.f32 %v517_v62, %v715_v16 }
 0x216   :  { %v338_v1 = vsel %vm323_vm1, %v519_v63, 0.0  ;;  %v346_v2 = vrot.slane %v345_v0, 4  ;;  %v321_v4 = vmul.f32 %v519_v63, %v316_v60  ;;  %v291_v7 = vsel %vm75_vm0, %v519_v63, 0.0 }
 0x217   :  { %v339_v6 = vrot.slane %v338_v1, 4  ;;  %v275_v11 = vmul.f32 %v519_v63, %v711_v5  ;;  %v331_v14 = vsel %vm323_vm1, %v322_v3, 0.0  ;;  %v292_v15 = vrot.slane %v291_v7, 4 }
 0x218   :  { %v347_v9 = vadd.f32 %v346_v2, %v345_v0  ;;  %v299_v17 = vrot.slane %v298_v8, 4  ;;  %v324_v18 = vsel %vm323_vm1, %v321_v4, 0.0  ;;  %v332_v24 = vrot.slane %v331_v14, 4 }
 0x219   :  { %v340_v10 = vadd.f32 %v339_v6, %v338_v1  ;;  %v293_v21 = vadd.f32 %v292_v15, %v291_v7  ;;  %v277_v25 = vsel %vm75_vm0, %v275_v11, 0.0  ;;  %v284_v26 = vsel %vm75_vm0, %v276_v12, 0.0 }
 0x21a   :  { %v348_v13 = vrot.slane %v347_v9, 2  ;;  %v300_v22 = vadd.f32 %v299_v17, %v298_v8  ;;  %v325_v5 = vrot.slane %v324_v18, 4  ;;  %v333_v34 = vadd.f32 %v332_v24, %v331_v14 }
 0x21b   :  { %v341_v19 = vrot.slane %v340_v10, 2  ;;  %v294_v16 = vrot.slane %v293_v21, 2  ;;  %v278_v35 = vrot.slane %v277_v25, 4  ;;  %v285_v36 = vrot.slane %v284_v26, 4 }
 0x21c   :  { %v349_v20 = vadd.f32 %v348_v13, %v347_v9  ;;  %v301_v28 = vrot.slane %v300_v22, 2  ;;  %v326_v37 = vadd.f32 %v325_v5, %v324_v18  ;;  %v334_v42 = vrot.slane %v333_v34, 2 }
 0x21d   :  { %v342_v23 = vadd.f32 %v341_v19, %v340_v10  ;;  %v295_v31 = vadd.f32 %v294_v16, %v293_v21  ;;  %v279_v43 = vadd.f32 %v278_v35, %v277_v25  ;;  %v286_v45 = vadd.f32 %v285_v36, %v284_v26 }
 0x21e   :  { %v350_v27 = vrot.slane %v349_v20, 1  ;;  %v302_v32 = vadd.f32 %v301_v28, %v300_v22  ;;  %v327_v44 = vrot.slane %v326_v37, 2  ;;  %v335_v46 = vadd.f32 %v334_v42, %v333_v34 }
 0x21f   :  { %v343_v29 = vrot.slane %v342_v23, 1  ;;  %v296_v38 = vrot.slane %v295_v31, 1  ;;  %v280_v47 = vrot.slane %v279_v43, 2  ;;  %v287_v49 = vrot.slane %v286_v45, 2 }
 0x220   :  { %v351_v30 = vadd.f32 %v350_v27, %v349_v20  ;;  %v303_v39 = vrot.slane %v302_v32, 1  ;;  %v328_v48 = vadd.f32 %v327_v44, %v326_v37  ;;  %v336_v52 = vrot.slane %v335_v46, 1 }
 0x221   :  { %v344_v33 = vadd.f32 %v343_v29, %v342_v23  ;;  %v297_v40 = vadd.f32 %v296_v38, %v295_v31  ;;  %v281_v54 = vadd.f32 %v280_v47, %v279_v43  ;;  %v288_v57 = vadd.f32 %v287_v49, %v286_v45 }
 0x222   :  { %520 = vrcp.f32 %v351_v30  ;;  %v304_v41 = vadd.f32 %v303_v39, %v302_v32  ;;  %v329_v55 = vrot.slane %v328_v48, 1  ;;  %v337_v62 = vadd.f32 %v336_v52, %v335_v46 }
 0x223   :  { %522 = vrcp.f32 %v344_v33  ;;  %v282_v0 = vrot.slane %v281_v54, 1  ;;  %v289_v4 = vrot.slane %v288_v57, 1 }
 0x224   :  { %524 = vrcp.f32 %v297_v40  ;;  %v330_v2 = vadd.f32 %v329_v55, %v328_v48 }
 0x225   :  { %526 = vrcp.f32 %v304_v41  ;;  %v283_v11 = vadd.f32 %v282_v0, %v281_v54  ;;  %v290_v13 = vadd.f32 %v289_v4, %v288_v57 }
 0x22c   :  { %v521_v50 = vpop.eup %520 }
 0x22d   :  { %v523_v51 = vpop.eup %522  ;;  %v355_v53 = vmul.f32 %v521_v50, %v351_v30 }
 0x22e   :  { %v354_v56 = vmul.f32 %v523_v51, %v344_v33  ;;  %v525_v59 = vpop.eup %524 }
 0x22f   :  { %v357_v58 = vsub.f32 2.0, %v355_v53  ;;  %v527_v61 = vpop.eup %526  ;;  %v307_v1 = vmul.f32 %v525_v59, %v297_v40 }
 0x230   :  { %v356_v60 = vsub.f32 2.0, %v354_v56  ;;  %v308_v6 = vmul.f32 %v527_v61, %v304_v41 }
 0x231   :  { %v359_v63 = vmul.f32 %v521_v50, %v357_v58  ;;  %v309_v8 = vsub.f32 2.0, %v307_v1 }
 0x232   :  { %v358_v3 = vmul.f32 %v523_v51, %v356_v60  ;;  %v310_v10 = vsub.f32 2.0, %v308_v6 }
 0x233   :  { %v361_v7 = vmul.f32 %v359_v63, %v337_v62  ;;  %v311_v12 = vmul.f32 %v525_v59, %v309_v8 }
 0x234   :  { %v360_v9 = vmul.f32 %v358_v3, %v330_v2  ;;  %v312_v14 = vmul.f32 %v527_v61, %v310_v10 }
 0x235   :  { %v313_v17 = vmul.f32 %v311_v12, %v283_v11 }
 0x236   :  { %v369_v15 = vsel %vm364_vm2, %v361_v7, %v360_v9  ;;  %v314_v18 = vmul.f32 %v312_v14, %v290_v13 }
 0x238   :  { %v365_v19 = vsel %vm364_vm2, %v314_v18, %v313_v17 }
 0x239   :  { %v371_v20 = vsel %vm75_vm0, %v365_v19, %v369_v15 }
 0x23a   :  { %v373_v21 = vsel %vm372_vm3, %v371_v20, 0.0 }
 0x23b   :  { %374 = vst [vmem:[#allocation8] sm:$0x3] %v373_v21 }
 0x23c   :  { %605 = shalt.err (!%p602_p0)
}
 0x23d   :  { %s606_s11 = scalar_lea.hbm %s755_s5, 32 }
 0x23e   :  { %p607_p1 = scmp.ne.s32.totalorder %s755_s5, %s606_s11  ;;  %p610_p2 = scmp.lt.u32.totalorder %s606_s11, %s755_s5 }
 0x240   :  { %p612_p3 = pnand %p610_p2, %p607_p1 }
 0x242   :  { %615 = shalt.err (!%p612_p3)
}
 0x243   :  { %384 = dma.vmem_to_hbm [thread:$0]  %s382_s4, 32, %s755_s5, [#allocation4]  }
 0x244   :  { %620 = dma.done.wait [#allocation4], 32  }
 0x245   :  { %621 = vsyncadd [#allocation4], 4294967264 }
 0x246   :  { %388 = vsyncpa [#allocation3], 1 }
 0x247   :  { %389 = vsyncpa [#allocation6], 1 }
 0x248   :  { %390 = vsyncpa [#allocation4], 1 }

</bundles_post_ra>
